<compile_context>
chip_gen: v7x
topology: tpu7x:2x2x1
jax: 0.10.0
libtpu: 0.0.40
codegen_flags: <defaults>
</compile_context>

<pallas_src>
import functools

import jax
import jax.numpy as jnp
from jax.experimental import pallas as pl
from jax.experimental.pallas import tpu as pltpu

_LANES = 128
_SUBLANES = 8
_MAX_TM = 2048                     # upper bound on the batch tile (review: 512-2048)
_SMALL_B = 256                     # at/below this: single block, latency path
_VMEM_BUDGET = 12 * 1024 * 1024    # keep double-buffered tiles under default scoped VMEM


def _round_up(n, m):
    return (n + m - 1) // m * m


def _cdiv(a, b):
    return (a + b - 1) // b


# ---------------------------------------------------------------------------
# Kernel
# ---------------------------------------------------------------------------
def _policy_kernel(x_ref, p_ref, out_ref, *, s_pad, fused_h, bf16_tanh):
    # Packed parameter slab layout (row offsets, all multiples of 8):
    #   [0, s_pad)                        : W1  (s_pad, 128)
    #   [s_pad, s_pad + fused_h)          : W2  (128, 128)   block-diag
    #   [s_pad + fused_h, boff)           : W3  (128, 128)   block-diag, padded
    #   boff + 0 / +8 / +16               : b1 / b2 / b3     (1, 128) rows
    boff = s_pad + 2 * fused_h

    x = x_ref[...]                                       # (tm, s_pad)
    w1 = p_ref[0:s_pad, :]                               # (s_pad, 128)
    w2 = p_ref[s_pad:s_pad + fused_h, :]                 # (128, 128)
    w3 = p_ref[s_pad + fused_h:boff, :]                  # (128, 128)
    b1 = p_ref[boff + 0:boff + 1, :]                     # (1, 128), aligned rows
    b2 = p_ref[boff + 8:boff + 9, :]
    b3 = p_ref[boff + 16:boff + 17, :]

    def act(v):
        if bf16_tanh:
            # EUP runs bf16 at ~2x the f32 rate on v6e/v7x; matmuls stay f32.
            return jnp.tanh(v.astype(jnp.bfloat16)).astype(jnp.float32)
        return jnp.tanh(v)

    h = act(jnp.dot(x, w1, preferred_element_type=jnp.float32) + b1)
    h = act(jnp.dot(h, w2, preferred_element_type=jnp.float32) + b2)
    y = jnp.dot(h, w3, preferred_element_type=jnp.float32) + b3
    out_ref[...] = y.astype(out_ref.dtype)


# ---------------------------------------------------------------------------
# Parameter init / packing (packing done ONCE per parameter update, not per call)
# ---------------------------------------------------------------------------
def init_policy_params(key, state_space, action_space, hidden=64, init_sigma=0.5):
    """Matches Policy.init_weights: N(0,1) weights, zero biases, sigma=0.5."""
    ks = jax.random.split(key, 6)

    def lin(k, fan_in, fan_out):
        # torch.nn.init.normal_(weight), weight shape (out, in); stored (in, out).
        w = jax.random.normal(k, (fan_out, fan_in), dtype=jnp.float32).T
        b = jnp.zeros((fan_out,), dtype=jnp.float32)
        return w, b

    w1a, b1a = lin(ks[0], state_space, hidden)
    w2a, b2a = lin(ks[1], hidden, hidden)
    w3a, b3a = lin(ks[2], hidden, action_space)
    w1c, b1c = lin(ks[3], state_space, hidden)
    w2c, b2c = lin(ks[4], hidden, hidden)
    w3c, b3c = lin(ks[5], hidden, 1)
    sigma = jnp.full((action_space,), init_sigma, dtype=jnp.float32)

    return {
        "w1a": w1a, "b1a": b1a, "w2a": w2a, "b2a": b2a, "w3a": w3a, "b3a": b3a,
        "sigma": sigma,
        "w1c": w1c, "b1c": b1c, "w2c": w2c, "b2c": b2c, "w3c": w3c, "b3c": b3c,
    }


def pack_policy_params(params, state_space):
    """Pack actor+critic into one fused (P_ROWS, 128) f32 slab + softplus(sigma)."""
    hidden = params["w1a"].shape[1]
    action_space = params["w3a"].shape[1]
    assert 2 * hidden <= _LANES, "fused hidden width must fit 128 lanes"
    assert action_space + 1 <= _LANES, "mean+value must fit 128 lanes"

    s_pad = _round_up(state_space, _SUBLANES)
    fused_h = _LANES
    boff = s_pad + 2 * fused_h
    p_rows = boff + 3 * _SUBLANES          # bias rows on aligned 8-row boundaries

    # Layer 1: concat along lanes.
    w1 = jnp.zeros((s_pad, _LANES), jnp.float32)
    w1 = w1.at[:state_space, :hidden].set(params["w1a"])
    w1 = w1.at[:state_space, hidden:2 * hidden].set(params["w1c"])
    b1 = jnp.zeros((_LANES,), jnp.float32)
    b1 = b1.at[:hidden].set(params["b1a"]).at[hidden:2 * hidden].set(params["b1c"])

    # Layer 2: block-diagonal.
    w2 = jnp.zeros((fused_h, _LANES), jnp.float32)
    w2 = w2.at[:hidden, :hidden].set(params["w2a"])
    w2 = w2.at[hidden:2 * hidden, hidden:2 * hidden].set(params["w2c"])
    b2 = jnp.zeros((_LANES,), jnp.float32)
    b2 = b2.at[:hidden].set(params["b2a"]).at[hidden:2 * hidden].set(params["b2c"])

    # Layer 3: actor mean -> lanes [0:A), critic value -> lane A.
    w3 = jnp.zeros((fused_h, _LANES), jnp.float32)
    w3 = w3.at[:hidden, :action_space].set(params["w3a"])
    w3 = w3.at[hidden:2 * hidden, action_space:action_space + 1].set(params["w3c"])
    b3 = jnp.zeros((_LANES,), jnp.float32)
    b3 = b3.at[:action_space].set(params["b3a"])
    b3 = b3.at[action_space:action_space + 1].set(params["b3c"])

    slab = jnp.zeros((p_rows, _LANES), jnp.float32)
    slab = slab.at[0:s_pad].set(w1)
    slab = slab.at[s_pad:s_pad + fused_h].set(w2)
    slab = slab.at[s_pad + fused_h:boff].set(w3)
    slab = slab.at[boff + 0].set(b1)
    slab = slab.at[boff + 8].set(b2)
    slab = slab.at[boff + 16].set(b3)

    # sigma is input-independent: compute softplus once (matches F.softplus).
    sigma = jax.nn.softplus(params["sigma"])

    return {
        "slab": slab,
        "sigma": sigma,
        "state_space": state_space,
        "action_space": action_space,
        "hidden": hidden,
        "s_pad": s_pad,
        "fused_h": fused_h,
    }


# ---------------------------------------------------------------------------
# Forward wrapper (single jit: kernel + mean/value slices fused, one dispatch)
# ---------------------------------------------------------------------------
@functools.partial(
    jax.jit,
    static_argnames=("s_pad", "fused_h", "action_space", "out_dtype", "bf16_tanh"),
)
def _policy_forward_impl(x, slab, sigma, *, s_pad, fused_h, action_space,
                         out_dtype, bf16_tanh):
    B, S = x.shape
    p_rows = slab.shape[0]

    x = x.astype(jnp.float32)
    # Never pad the batch dim (ragged last block is clipped by Pallas); only
    # pad the tiny feature dim when it is not sublane-aligned.
    if S != s_pad:
        x = jnp.pad(x, ((0, 0), (0, s_pad - S)))

    # Batch tile selection: big tiles amortize the ~0.35us/step grid overhead,
    # capped so double-buffered in+out tiles stay inside the default scoped
    # VMEM limit on all chips; >=2 balanced "parallel" steps at large B so the
    # grid shards across both TensorCores on v7x.
    bytes_per_row = (s_pad + _LANES) * 4 * 2          # in + out, double-buffered, f32
    vmem_tm = max(_SUBLANES,
                  (_VMEM_BUDGET // bytes_per_row) // _SUBLANES * _SUBLANES)
    max_tm = min(_MAX_TM, vmem_tm)
    if B <= _SMALL_B:
        tm = min(_round_up(B, _SUBLANES), max_tm)
    else:
        tm = min(max_tm, _round_up(_cdiv(B, 2), _SUBLANES))
    grid = (_cdiv(B, tm),)

    kernel = functools.partial(_policy_kernel, s_pad=s_pad, fused_h=fused_h,
                               bf16_tanh=bf16_tanh)

    out = pl.pallas_call(
        kernel,
        out_shape=jax.ShapeDtypeStruct((B, _LANES), jnp.dtype(out_dtype)),
        grid_spec=pltpu.PrefetchScalarGridSpec(
            num_scalar_prefetch=0,
            grid=grid,
            in_specs=[
                pl.BlockSpec((tm, s_pad), lambda i: (i, 0)),
                # Same block index every step -> parameter slab stays resident
                # in VMEM (one HBM->VMEM DMA total).
                pl.BlockSpec((p_rows, _LANES), lambda i: (0, 0)),
            ],
            out_specs=pl.BlockSpec((tm, _LANES), lambda i: (i, 0)),
        ),
        compiler_params=pltpu.CompilerParams(
            dimension_semantics=("parallel",)),
    )(x, slab)

    mean = out[:, :action_space].astype(jnp.float32)
    value = out[:, action_space:action_space + 1].astype(jnp.float32)
    return mean, sigma, value


def policy_forward(x, packed, *, out_dtype=jnp.float32, bf16_tanh=False):
    """Returns (action_mean (B, A), sigma (A,), action_value (B, 1)).

    out_dtype=bfloat16 / bf16_tanh=True are optional reduced-precision paths
    (lower HBM writeback / halved EUP tanh cost); defaults keep exact f32
    numerics vs. the PyTorch reference.

    TODO(synk): torch.distributions.Normal itself has no Pallas equivalent;
    the distribution is returned as its parameters (mean, sigma).
    """
    return _policy_forward_impl(
        x, packed["slab"], packed["sigma"],
        s_pad=packed["s_pad"], fused_h=packed["fused_h"],
        action_space=packed["action_space"],
        out_dtype=jnp.dtype(out_dtype).name, bf16_tanh=bool(bf16_tanh))


# ---------------------------------------------------------------------------
# Pure-JAX reference of the PyTorch forward (correctness check)
# ---------------------------------------------------------------------------
def _reference_forward(x, p):
    h = jnp.tanh(x @ p["w1a"] + p["b1a"])
    h = jnp.tanh(h @ p["w2a"] + p["b2a"])
    mean = h @ p["w3a"] + p["b3a"]
    sigma = jax.nn.softplus(p["sigma"])
    hc = jnp.tanh(x @ p["w1c"] + p["b1c"])
    hc = jnp.tanh(hc @ p["w2c"] + p["b2c"])
    value = hc @ p["w3c"] + p["b3c"]
    return mean, sigma, value


if __name__ == "__main__":
    key = jax.random.PRNGKey(0)
    k_x, k_p, k_x2 = jax.random.split(key, 3)

    batch = 2
    state_space = 16
    action_space = 4
    hidden = 64

    x = jax.random.normal(k_x, (batch, state_space), dtype=jnp.float32)
    params = init_policy_params(k_p, state_space, action_space, hidden)
    packed = pack_policy_params(params, state_space)       # done once per update

    # Small-batch (rollout) path: single block, single dispatch.
    mean, sigma, value = policy_forward(x, packed)
    jax.block_until_ready((mean, sigma, value))

    ref_mean, ref_sigma, ref_value = _reference_forward(x, params)
    assert mean.shape == (batch, action_space)
    assert sigma.shape == (action_space,)
    assert value.shape == (batch, 1)
    assert jnp.allclose(mean, ref_mean, atol=1e-4, rtol=1e-4)
    assert jnp.allclose(sigma, ref_sigma, atol=1e-6, rtol=1e-6)
    assert jnp.allclose(value, ref_value, atol=1e-4, rtol=1e-4)

    # Multi-block path with a ragged last block (grid of 2 "parallel" steps) --
    # exercises the large-batch tiling / clipped-block logic.
    big_batch = 300
    xb = jax.random.normal(k_x2, (big_batch, state_space), dtype=jnp.float32)
    mean_b, _, value_b = policy_forward(xb, packed)
    jax.block_until_ready((mean_b, value_b))
    ref_mean_b, _, ref_value_b = _reference_forward(xb, params)
    assert mean_b.shape == (big_batch, action_space)
    assert value_b.shape == (big_batch, 1)
    assert jnp.allclose(mean_b, ref_mean_b, atol=1e-4, rtol=1e-4)
    assert jnp.allclose(value_b, ref_value_b, atol=1e-4, rtol=1e-4)

    # Gated reduced-precision path (bf16 output slab + bf16 tanh): lower HBM
    # writeback on v5e/v6e, halved EUP cost on v6e/v7x.  Loose sanity check.
    mean_f, _, value_f = policy_forward(xb, packed,
                                        out_dtype=jnp.bfloat16, bf16_tanh=True)
    jax.block_until_ready((mean_f, value_f))
    assert bool(jnp.all(jnp.isfinite(mean_f))) and bool(jnp.all(jnp.isfinite(value_f)))
    assert float(jnp.max(jnp.abs(mean_f - ref_mean_b))) < 1.0
    assert float(jnp.max(jnp.abs(value_f - ref_value_b))) < 1.0

    print("KERNEL_OK")
</pallas_src>

<mosaic_0001>
module attributes {stable_mosaic.version = 11 : i64} {
  func.func @_policy_kernel(%arg0: i32, %arg1: memref<8x16xf32, #tpu.memory_space<vmem>>, %arg2: memref<296x128xf32, #tpu.memory_space<vmem>>, %arg3: memref<8x128xf32, #tpu.memory_space<vmem>>) attributes {dimension_semantics = [#tpu.dimension_semantics<parallel>], iteration_bounds = array<i64: 1>, scalar_prefetch = 0 : i64, scratch_operands = 0 : i64, tpu.core_type = #tpu.core_type<tc>, window_params = [{transform_indices = @transform_0, window_bounds = array<i64: 8, 16>}, {pipeline_mode = #tpu.pipeline_mode<synchronous>, transform_indices = @transform_1, window_bounds = array<i64: 296, 128>}, {transform_indices = @transform_2, window_bounds = array<i64: 8, 128>}]} {
    %c0 = arith.constant 0 : index
    %c0_0 = arith.constant 0 : index
    %0 = vector.load %arg1[%c0, %c0_0] : memref<8x16xf32, #tpu.memory_space<vmem>>, vector<8x16xf32>
    %c0_1 = arith.constant 0 : index
    %c0_2 = arith.constant 0 : index
    %1 = vector.load %arg2[%c0_1, %c0_2] : memref<296x128xf32, #tpu.memory_space<vmem>>, vector<16x128xf32>
    %c16 = arith.constant 16 : index
    %c0_3 = arith.constant 0 : index
    %2 = vector.load %arg2[%c16, %c0_3] : memref<296x128xf32, #tpu.memory_space<vmem>>, vector<128x128xf32>
    %c144 = arith.constant 144 : index
    %c0_4 = arith.constant 0 : index
    %3 = vector.load %arg2[%c144, %c0_4] : memref<296x128xf32, #tpu.memory_space<vmem>>, vector<128x128xf32>
    %c272 = arith.constant 272 : index
    %c0_5 = arith.constant 0 : index
    %4 = vector.load %arg2[%c272, %c0_5] : memref<296x128xf32, #tpu.memory_space<vmem>>, vector<1x128xf32>
    %c280 = arith.constant 280 : index
    %c0_6 = arith.constant 0 : index
    %5 = vector.load %arg2[%c280, %c0_6] : memref<296x128xf32, #tpu.memory_space<vmem>>, vector<1x128xf32>
    %c288 = arith.constant 288 : index
    %c0_7 = arith.constant 0 : index
    %6 = vector.load %arg2[%c288, %c0_7] : memref<296x128xf32, #tpu.memory_space<vmem>>, vector<1x128xf32>
    %cst = arith.constant dense<0.000000e+00> : vector<8x128xf32>
    %7 = tpu.matmul %0, %1, %cst {dimension_numbers = #tpu.dot_dimension_numbers<[1], [0], [0], [1], [0, 0, 1, 1], [], []>} : vector<8x16xf32>, vector<16x128xf32>, vector<8x128xf32> -> vector<8x128xf32>
    %8 = vector.broadcast %4 : vector<1x128xf32> to vector<8x128xf32>
    %9 = arith.addf %7, %8 : vector<8x128xf32>
    %10 = math.tanh %9 : vector<8x128xf32>
    %cst_8 = arith.constant dense<0.000000e+00> : vector<8x128xf32>
    %11 = tpu.matmul %10, %2, %cst_8 {dimension_numbers = #tpu.dot_dimension_numbers<[1], [0], [0], [1], [0, 0, 1, 1], [], []>} : vector<8x128xf32>, vector<128x128xf32>, vector<8x128xf32> -> vector<8x128xf32>
    %12 = vector.broadcast %5 : vector<1x128xf32> to vector<8x128xf32>
    %13 = arith.addf %11, %12 : vector<8x128xf32>
    %14 = math.tanh %13 : vector<8x128xf32>
    %cst_9 = arith.constant dense<0.000000e+00> : vector<8x128xf32>
    %15 = tpu.matmul %14, %3, %cst_9 {dimension_numbers = #tpu.dot_dimension_numbers<[1], [0], [0], [1], [0, 0, 1, 1], [], []>} : vector<8x128xf32>, vector<128x128xf32>, vector<8x128xf32> -> vector<8x128xf32>
    %16 = vector.broadcast %6 : vector<1x128xf32> to vector<8x128xf32>
    %17 = arith.addf %15, %16 : vector<8x128xf32>
    %c0_10 = arith.constant 0 : index
    %c0_11 = arith.constant 0 : index
    %18 = vector.load %arg3[%c0_10, %c0_11] : memref<8x128xf32, #tpu.memory_space<vmem>>, vector<8x128xf32>
    tpu.vector_store %arg3[%c0_10, %c0_11], %17 {strides = array<i32>} : memref<8x128xf32, #tpu.memory_space<vmem>>, vector<8x128xf32>,
    return
  }
  func.func @transform_0(%arg0: i32) -> (i32, i32) {
    %c0_i32 = arith.constant 0 : i32
    %c0_i32_0 = arith.constant 0 : i32
    return %arg0, %c0_i32 : i32, i32
  }
  func.func @transform_1(%arg0: i32) -> (i32, i32) {
    %c0_i32 = arith.constant 0 : i32
    %c0_i32_0 = arith.constant 0 : i32
    %c0_i32_1 = arith.constant 0 : i32
    return %c0_i32, %c0_i32_0 : i32, i32
  }
  func.func @transform_2(%arg0: i32) -> (i32, i32) {
    %c0_i32 = arith.constant 0 : i32
    %c0_i32_0 = arith.constant 0 : i32
    return %arg0, %c0_i32 : i32, i32
  }
}

</mosaic_0001>

<bundles_post_ra>
// kernel: _policy_forward_impl.1
= control target key start
LH: loop header
LB: loop body
LE: loop exit
PB: predicated region body
PF: predicated region fallthrough
CT: control target
= control target key end

     0   :  { %7 = vsyncpa [#allocation3], 0  ;;  %s535_s9 = smov [#allocation2]   ;;  %s594_s0 = inlined_call_operand.vmem [shape: f32[2,16], index: 0, kind: input, shape index: {}]   ;;  %s595_s1 = inlined_call_operand.hbm [shape: f32[296,128], index: 1, kind: input, shape index: {}]   ;;  %s596_s2 = inlined_call_operand.vmem [shape: f32[2,128], index: 2, kind: output, shape index: {}]  }
   0x1   :  { %s15_s10 = sshll.u32 %s535_s9, 4  ;;  %s511_s13 = scalar_lea.hbm %s595_s1, 4736  ;;  %s16_s10 = int_to_ptr.vmem [resolvable:$true] %s15_s10 }
   0x2   :  { %p512_p0 = scmp.ne.s32.totalorder %s595_s1, %s511_s13  ;;  %p515_p1 = scmp.lt.u32.totalorder %s511_s13, %s595_s1 }
   0x4   :  { %p517_p2 = pnand %p515_p1, %p512_p0 }
   0x6   :  { %520 = shalt.err (!%p517_p2)
}
   0x7   :  { %s521_s18 = scalar_lea.vmem %s16_s10, 4736  ;;  %p526_p4 = scmp.lt.s32.totalorder %s16_s10, %s16_s10 }
   0x8   :  { %p522_p3 = scmp.ne.s32.totalorder %s16_s10, %s521_s18  ;;  %p527_p5 = scmp.lt.s32.totalorder %s521_s18, %s521_s18 }
   0xa   :  { %p528_p6 = por %p527_p5, %p526_p4 }
   0xc   :  { %p529_p7 = pnand %p528_p6, %p522_p3 }
   0xe   :  { %532 = shalt.err (!%p529_p7)
}
   0xf   :  { %s536_s19 = smov 128   ;;  %s537_s20 = smov 8  }
  0x10   :  { %21 = dma.hbm_to_vmem [thread:$0]  %s595_s1, 4736, %s16_s10, [#allocation3], %s536_s19, %s536_s19, %s537_s20  }
  0x11   :  { %533 = dma.done.wait [#allocation3], 4736  }
  0x12   :  { %534 = vsyncadd [#allocation3], 4294962560  ;;  %v538_v0 = vmov 0.0|0.0   ;;  %vm539_vm0 = vmmov 0   ;;  %v540_v1 = vmov 0.0   ;;  %v26_v2 = vld [vmem:[#allocation2] sm:$0xff] }
  0x13   :  { %450 = vmatprep.subr.bf16.mxu0 %v538_v0  ;;  %377 = vmatprep.mubr.msk.f32.mxu0 %vm539_vm0, %v540_v1  ;;  %v27_v3 = vld [vmem:[#allocation2 + $0x8] sm:$0xff]  ;;  %v28_v5 = vld [vmem:[#allocation2 + $0x10] sm:$0xff]  ;;  %v29_v6 = vld [vmem:[#allocation2 + $0x18] sm:$0xff]  ;;  %vm67_vm1 = vcmask 130048  }
  0x14   :  { %453 = vmatprep.subr.bf16.mxu1 %v538_v0  ;;  %412 = vmatprep.mubr.msk.f32.mxu1 %vm539_vm0, %v540_v1  ;;  %v451_v4 = vpack.c.bf16 %v27_v3, %v26_v2  ;;  %v30_v7 = vld [vmem:[#allocation2 + $0x20] sm:$0xff]  ;;  %v454_v8 = vpack.c.bf16 %v29_v6, %v28_v5  ;;  %v31_v9 = vld [vmem:[#allocation2 + $0x28] sm:$0xff]  ;;  %v32_v12 = vld [vmem:[#allocation2 + $0x30] sm:$0xff] }
  0x15   :  { %v25_v10 = vld [vmem:[%s594_s0] sm:$0xff]  ;;  %v457_v11 = vpack.c.bf16 %v31_v9, %v30_v7  ;;  %v33_v13 = vld [vmem:[#allocation2 + $0x38] sm:$0xff]  ;;  %v35_v16 = vld [vmem:[#allocation2 + $0x48] sm:$0xff] }
  0x16   :  { %452 = vmatpush3.bf16.msra.mxu0 %v451_v4  ;;  %455 = vmatpush3.bf16.msra.mxu1 %v454_v8  ;;  %v460_v14 = vpack.c.bf16 %v33_v13, %v32_v12  ;;  %v34_v15 = vld [vmem:[#allocation2 + $0x40] sm:$0xff]  ;;  %v36_v18 = vld [vmem:[#allocation2 + $0x50] sm:$0xff]  ;;  %v37_v19 = vld [vmem:[#allocation2 + $0x58] sm:$0xff] }
  0x17   :  { %477 = vmatprep.subr.bf16.mxu0 %v538_v0  ;;  %456 = vmatprep.subr.bf16.mxu1 %v538_v0  ;;  %v463_v17 = vpack.c.bf16 %v35_v16, %v34_v15  ;;  %v466_v20 = vpack.c.bf16 %v37_v19, %v36_v18  ;;  %v38_v21 = vld [vmem:[#allocation2 + $0x60] sm:$0xff]  ;;  %v39_v22 = vld [vmem:[#allocation2 + $0x68] sm:$0xff]  ;;  %v40_v24 = vld [vmem:[#allocation2 + $0x70] sm:$0xff] }
  0x18   :  { %v469_v23 = vpack.c.bf16 %v39_v22, %v38_v21  ;;  %v41_v25 = vld [vmem:[#allocation2 + $0x78] sm:$0xff]  ;;  %v42_v27 = vld [vmem:[#allocation2 + $0x80] sm:$0xff]  ;;  %v43_v28 = vld [vmem:[#allocation2 + $0x88] sm:$0xff] }
  0x19   :  { %378 = vmatmul.mubr.msk.f32.vlgmr.msra.gmra.mrb[0].mxu0 %vm67_vm1, %v25_v10  ;;  %v472_v26 = vpack.c.bf16 %v41_v25, %v40_v24  ;;  %v475_v29 = vpack.c.bf16 %v43_v28, %v42_v27  ;;  %v44_v30 = vld [vmem:[#allocation2 + $0x90] sm:$0xff]  ;;  %v45_v31 = vld [vmem:[#allocation2 + $0x98] sm:$0xff]  ;;  %v46_v32 = vld [vmem:[#allocation2 + $0xa0] sm:$0xff] }
  0x1a   :  { %447 = vmatprep.mubr.msk.f32.mxu0 %vm539_vm0, %v540_v1  ;;  %458 = vmatpush3.bf16.msra.mxu1 %v457_v11  ;;  %v478_v33 = vpack.c.bf16 %v45_v31, %v44_v30  ;;  %v47_v34 = vld [vmem:[#allocation2 + $0xa8] sm:$0xff]  ;;  %v48_v36 = vld [vmem:[#allocation2 + $0xb0] sm:$0xff]  ;;  %v49_v37 = vld [vmem:[#allocation2 + $0xb8] sm:$0xff] }
  0x1b   :  { %459 = vmatprep.subr.bf16.mxu1 %v538_v0  ;;  %v481_v35 = vpack.c.bf16 %v47_v34, %v46_v32  ;;  %v484_v38 = vpack.c.bf16 %v49_v37, %v48_v36  ;;  %v50_v39 = vld [vmem:[#allocation2 + $0xc0] sm:$0xff]  ;;  %v51_v40 = vld [vmem:[#allocation2 + $0xc8] sm:$0xff]  ;;  %v52_v42 = vld [vmem:[#allocation2 + $0xd0] sm:$0xff] }
  0x1c   :  { %479 = vmatpush3.bf16.msra.mxu0 %v478_v33  ;;  %v487_v41 = vpack.c.bf16 %v51_v40, %v50_v39  ;;  %v53_v43 = vld [vmem:[#allocation2 + $0xd8] sm:$0xff]  ;;  %v332_v45 = vld [vmem:[#allocation2 + $0x110] ss:$0 sm:$0xff]  ;;  %v54_v50 = vld [vmem:[#allocation2 + $0xe0] sm:$0xff] }
  0x1d   :  { %480 = vmatprep.subr.bf16.mxu0 %v538_v0  ;;  %v490_v44 = vpack.c.bf16 %v53_v43, %v52_v42  ;;  %v55_v51 = vld [vmem:[#allocation2 + $0xe8] sm:$0xff]  ;;  %v56_v53 = vld [vmem:[#allocation2 + $0xf0] sm:$0xff]  ;;  %v57_v54 = vld [vmem:[#allocation2 + $0xf8] sm:$0xff] }
  0x1e   :  { %461 = vmatpush3.bf16.msra.mxu1 %v460_v14  ;;  %v493_v52 = vpack.c.bf16 %v55_v51, %v54_v50  ;;  %v496_v55 = vpack.c.bf16 %v57_v54, %v56_v53  ;;  %v58_v56 = vld [vmem:[#allocation2 + $0x100] sm:$0xff]  ;;  %v59_v57 = vld [vmem:[#allocation2 + $0x108] sm:$0xff]  ;;  %v334_v59 = vld [vmem:[#allocation2 + $0x118] ss:$0 sm:$0xff] }
  0x1f   :  { %462 = vmatprep.subr.bf16.mxu1 %v538_v0  ;;  %v499_v58 = vpack.c.bf16 %v59_v57, %v58_v56  ;;  %v335_v1 = vld [vmem:[#allocation2 + $0x120] ss:$0 sm:$0xff] }
  0x20   :  { %482 = vmatpush3.bf16.msra.mxu0 %v481_v35 }
  0x21   :  { %483 = vmatprep.subr.bf16.mxu0 %v538_v0 }
  0x22   :  { %464 = vmatpush3.bf16.msra.mxu1 %v463_v17 }
  0x23   :  { %465 = vmatprep.subr.bf16.mxu1 %v538_v0 }
  0x24   :  { %485 = vmatpush3.bf16.msra.mxu0 %v484_v38 }
  0x25   :  { %486 = vmatprep.subr.bf16.mxu0 %v538_v0 }
  0x26   :  { %467 = vmatpush3.bf16.msra.mxu1 %v466_v20 }
  0x27   :  { %468 = vmatprep.subr.bf16.mxu1 %v538_v0 }
  0x28   :  { %488 = vmatpush3.bf16.msra.mxu0 %v487_v41 }
  0x29   :  { %489 = vmatprep.subr.bf16.mxu0 %v538_v0 }
  0x2a   :  { %470 = vmatpush3.bf16.msra.mxu1 %v469_v23 }
  0x2b   :  { %471 = vmatprep.subr.bf16.mxu1 %v538_v0 }
  0x2c   :  { %491 = vmatpush3.bf16.msra.mxu0 %v490_v44 }
  0x2d   :  { %492 = vmatprep.subr.bf16.mxu0 %v538_v0 }
  0x2e   :  { %473 = vmatpush3.bf16.msra.mxu1 %v472_v26 }
  0x2f   :  { %474 = vmatprep.subr.bf16.mxu1 %v538_v0 }
  0x30   :  { %494 = vmatpush3.bf16.msra.mxu0 %v493_v52 }
  0x31   :  { %495 = vmatprep.subr.bf16.mxu0 %v538_v0 }
  0x32   :  { %476 = vmatpush3.bf16.msra.mxu1 %v475_v29 }
  0x34   :  { %497 = vmatpush3.bf16.msra.mxu0 %v496_v55 }
  0x35   :  { %498 = vmatprep.subr.bf16.mxu0 %v538_v0 }
  0x38   :  { %500 = vmatpush3.bf16.msra.mxu0 %v499_v58 }
  0xec   :  { %v137_v46 = vpop.f32.mrb[0].mxu0 }
  0xed   :  { %v138_v47 = vadd.f32 %v332_v45, %v137_v46  ;;  %v379_v48 = vpop.f32.mrb[1].mxu0 }
  0xef   :  { %507 = vtanh.f32 %v138_v47 }
  0xf9   :  { %v508_v49 = vpop.eup %507 }
  0xfa   :  { %413 = vmatmul.mubr.f32.vlgmr.msra.gmra.mrb[0].mxu1 %v508_v49 }
 0x1cd   :  { %v212_v60 = vpop.f32.mrb[0].mxu1 }
 0x1ce   :  { %v213_v61 = vadd.f32 %v334_v59, %v212_v60  ;;  %v414_v62 = vpop.f32.mrb[1].mxu1 }
 0x1d0   :  { %509 = vtanh.f32 %v213_v61 }
 0x1da   :  { %v510_v63 = vpop.eup %509 }
 0x1db   :  { %448 = vmatmul.mubr.f32.vlgmr.msra.gmra.mrb[2].mxu0 %v510_v63 }
 0x2ae   :  { %v287_v2 = vpop.f32.mrb[2].mxu0 }
 0x2af   :  { %v288_v3 = vadd.f32 %v335_v1, %v287_v2  ;;  %v449_v4 = vpop.f32.mrb[3].mxu0 }
 0x2b1   :  { %291 = vst [vmem:[#allocation4] sm:$0xff] %v288_v3 }
 0x2b8   :  { %v309_v5 = vld [vmem:[#allocation4] sm:$0x3] }
 0x2b9   :  { %310 = vst [vmem:[%s596_s2] sm:$0x3] %v309_v5 }
 0x2ba   :  { %327 = vsyncpa [#allocation3], 1 }

</bundles_post_ra>
